<compile_context>
chip_gen: v7x
topology: tpu7x:2x2x1
jax: 0.10.0
libtpu: 0.0.40
codegen_flags: <defaults>
</compile_context>

<pallas_src>
import jax
import jax.numpy as jnp
from jax.experimental import pallas as pl
from jax.experimental.pallas import tpu as pltpu


def _round_up(x, m):
    return ((x + m - 1) // m) * m


def _default_images_per_step(n):
    """Chip-aware batch fusing: single-TC chips (v5e/v6e) fuse the whole batch
    into one grid step; 2-TC chips (v7x, also v4/v5p) and unknown devices keep
    >=2 'parallel' grid steps so both TensorCores get work."""
    try:
        kind = jax.devices()[0].device_kind.lower()
    except Exception:
        return 1
    if any(t in kind for t in ("v5e", "v5 lite", "v5lite", "v6e", "v6 lite", "v6lite")):
        return n
    return 1


def prepare_conv2d_block_params(weight, bias, *, H, W, st=1, padding=0,
                                compute_dtype=jnp.float32):
    """One-time (hoisted out of the per-call forward) prep of banded weight + bias.

    Returns:
      w_all: (K_row, ks*n_lanes) -- per-tap banded slabs Wb[kh] stacked along the
             output (lane) axis, zero-padded so K_row, n_lanes are multiples of 128.
             Wb[kh][w*Cin + c, ow*Cout + co] = weight[co, c, kh, w - ow] (0 <= w-ow < ks).
      b_row: (1, n_lanes) f32 bias tiled over OW (epilogue stays f32).
    """
    Cout, Cin, KH, KW = weight.shape
    assert KH == KW, "square kernels only"
    ks = KH
    if st != 1:
        # TODO(synk): stride>1 needs a strided band (w == ow*st + kw).
        raise NotImplementedError("conv2d_block kernel supports st=1 only")
    Wp = W + 2 * padding
    OW = Wp - ks + 1
    K = Wp * Cin
    K_row = _round_up(K, 128)
    n_lanes = _round_up(OW * Cout, 128)

    w_taps = jnp.transpose(weight.astype(jnp.float32), (2, 3, 1, 0))   # (KH,KW,Cin,Cout)
    slabs = []
    for kh in range(ks):
        acc = jnp.zeros((K, OW * Cout), jnp.float32)
        for kw in range(ks):
            # band[w, ow] = 1  iff  w - ow == kw   (stride 1)
            band = jnp.eye(Wp, OW, k=-kw, dtype=jnp.float32)
            acc = acc + jnp.kron(band, w_taps[kh, kw])
        slabs.append(jnp.pad(acc, ((0, K_row - K), (0, n_lanes - OW * Cout))))
    w_all = jnp.concatenate(slabs, axis=1).astype(compute_dtype)       # (K_row, ks*n_lanes)

    b_row = jnp.pad(jnp.tile(bias.astype(jnp.float32), OW),
                    (0, n_lanes - OW * Cout)).reshape(1, n_lanes)
    return w_all, b_row


def conv2d_block_forward(x_nchw, w_all, b_row, *, ks, st, padding, out_dim,
                         compute_dtype=jnp.float32, out_dtype=jnp.float32,
                         images_per_step=None):
    """Conv2dBlock forward: ELU(conv2d(zeropad(x), weight) + bias). NCHW in/out."""
    N, Cin, H, W = x_nchw.shape
    if st != 1:
        raise NotImplementedError("conv2d_block_forward kernel supports st=1 only")
    Hp, Wp = H + 2 * padding, W + 2 * padding
    OH, OW = Hp - ks + 1, Wp - ks + 1
    Cout = out_dim
    K = Wp * Cin
    K_row = w_all.shape[0]
    n_lanes = w_all.shape[1] // ks
    assert K_row == _round_up(K, 128) and n_lanes >= OW * Cout
    assert w_all.dtype == jnp.dtype(compute_dtype), "w_all must be pre-cast to compute_dtype"

    # Pad Hp to the sublane packing (8 rows for 32-bit, 16 for 16-bit dtypes) so
    # folding the batch into the MXU M axis is a pure-view reshape (no relayout).
    sub = 8 * (4 // jnp.dtype(compute_dtype).itemsize)
    Hp_pad = _round_up(Hp, sub)

    nb = images_per_step if images_per_step is not None else _default_images_per_step(N)
    if nb < 1 or N % nb != 0:
        nb = 1

    # --- tiny per-call input prep (no im2col / patch blow-up in HBM) ---------
    x_nhwc = jnp.transpose(x_nchw, (0, 2, 3, 1))
    x_pad = jnp.pad(x_nhwc, ((0, 0),
                             (padding, padding + (Hp_pad - Hp)),
                             (padding, padding),
                             (0, 0)))
    x_rows = x_pad.reshape(N, Hp_pad, K)
    x_rows = jnp.pad(x_rows, ((0, 0), (0, 0), (0, K_row - K))).astype(compute_dtype)

    def kernel(x_ref, w_ref, b_ref, o_ref):
        # One fused MXU matmul per grid step:
        #   LHS (nb*Hp_pad, K_row)   = nb padded images stacked along M (pure view)
        #   RHS (K_row, ks*n_lanes)  = per-tap banded weights stacked along N
        lhs = x_ref[...].reshape(nb * Hp_pad, K_row)
        p = jnp.dot(lhs, w_ref[...], preferred_element_type=jnp.float32)
        bias = b_ref[...]                                   # (1, n_lanes) f32
        for b in range(nb):                                 # static unroll (nb <= N)
            base = b * Hp_pad
            # conv[oh] = sum_kh P[base + oh + kh, kh-th 128-lane slab]; only f32
            # result slices (aligned lanes, small sublane offsets) -- the bf16
            # input is never sliced/cast.
            acc = p[base:base + OH, 0:n_lanes]
            for kh in range(1, ks):
                acc = acc + p[base + kh:base + kh + OH,
                              kh * n_lanes:(kh + 1) * n_lanes]
            acc = acc + bias                                # f32 epilogue
            # ELU (alpha=1): single EUP transcendental. exp(z)-1 vs expm1(z)
            # differs by ~1e-7 absolute near 0- (inside the 1e-5 parity budget).
            z = jnp.minimum(acc, 0.0)
            o_ref[b] = jnp.where(acc > 0.0, acc, jnp.exp(z) - 1.0).astype(o_ref.dtype)

    out = pl.pallas_call(
        kernel,
        out_shape=jax.ShapeDtypeStruct((N, OH, n_lanes), out_dtype),
        grid=(N // nb,),
        in_specs=[
            pl.BlockSpec((nb, Hp_pad, K_row), lambda s: (s, 0, 0)),
            # Resident banded weight: (K_row, ks*n_lanes) = 192 KiB f32 here.
            # TODO(synk): for large Cin/Cout/W this slab grows ~(Wp*OW/ks)x the raw
            # weight and ~80-95% of its MACs are structural zeros: tile OW/Cout on
            # the grid, set vmem_limit_bytes and/or pipeline_mode=pl.Buffered(1)
            # before it overflows v7x's 64 MiB VMEM, or switch to a per-tap
            # (Cin,Cout) layout with OH*OW folded into M once compute-bound.
            pl.BlockSpec((K_row, ks * n_lanes), lambda s: (0, 0)),
            pl.BlockSpec((1, n_lanes), lambda s: (0, 0)),
        ],
        out_specs=pl.BlockSpec((nb, OH, n_lanes), lambda s: (s, 0, 0)),
        compiler_params=pltpu.CompilerParams(
            dimension_semantics=("parallel",)),
    )(x_rows, w_all, b_row)

    # Drop lane padding (none for this config) and return NCHW to match the
    # PyTorch module. NHWC-capable consumers can take `out[..., :OW*Cout]`
    # directly and skip this tiny transpose.
    y = out[:, :, :OW * Cout].reshape(N, OH, OW, Cout)
    return jnp.transpose(y, (0, 3, 1, 2))


def _reference(x_nchw, weight, bias, *, ks, st, padding):
    """Plain-JAX reference: conv (NCHW/OIHW) + bias + ELU."""
    y = jax.lax.conv_general_dilated(
        x_nchw, weight, window_strides=(st, st),
        padding=[(padding, padding), (padding, padding)],
        dimension_numbers=("NCHW", "OIHW", "NCHW"))
    y = y + bias.reshape(1, -1, 1, 1)
    return jax.nn.elu(y)


if __name__ == "__main__":
    # Conv2dBlock(in_dim=4, out_dim=8, ks=3, st=1, padding=1, norm='none',
    #             activation='elu', pad_type='zero')
    in_dim, out_dim, ks, st, padding = 4, 8, 3, 1, 1
    N, H, W = 2, 16, 16

    key = jax.random.PRNGKey(0)
    kx, kw_, kb = jax.random.split(key, 3)
    x = jax.random.normal(kx, (N, in_dim, H, W), dtype=jnp.float32)
    fan_in = in_dim * ks * ks
    bound = 1.0 / (fan_in ** 0.5)
    weight = jax.random.uniform(kw_, (out_dim, in_dim, ks, ks),
                                minval=-bound, maxval=bound, dtype=jnp.float32)
    bias = jax.random.uniform(kb, (out_dim,),
                              minval=-bound, maxval=bound, dtype=jnp.float32)

    # One-time (init-time) parameter prep, hoisted out of the traced forward.
    w_all_f32, b_row = prepare_conv2d_block_params(
        weight, bias, H=H, W=W, st=st, padding=padding)
    w_all_bf16, _ = prepare_conv2d_block_params(
        weight, bias, H=H, W=W, st=st, padding=padding, compute_dtype=jnp.bfloat16)
    w_all_f32, b_row, w_all_bf16 = jax.block_until_ready(
        (w_all_f32, b_row, w_all_bf16))

    fwd_f32 = jax.jit(lambda a, wb, br: conv2d_block_forward(
        a, wb, br, ks=ks, st=st, padding=padding, out_dim=out_dim))
    fwd_bf16 = jax.jit(lambda a, wb, br: conv2d_block_forward(
        a, wb, br, ks=ks, st=st, padding=padding, out_dim=out_dim,
        compute_dtype=jnp.bfloat16))

    y_ref = _reference(x, weight, bias, ks=ks, st=st, padding=padding)

    # f32 path: parity with the PyTorch module semantics.
    y = jax.block_until_ready(fwd_f32(x, w_all_f32, b_row))
    assert y.shape == (N, out_dim, H, W)
    assert jnp.allclose(y, y_ref, atol=1e-5, rtol=1e-5), "f32 kernel mismatch vs reference"

    # bf16-stored input/weight (halves HBM read bytes on this mem-bound kernel),
    # f32 MXU accumulation + f32 epilogue; coarse tolerance for bf16 rounding.
    y_bf16 = jax.block_until_ready(fwd_bf16(x, w_all_bf16, b_row))
    assert y_bf16.shape == (N, out_dim, H, W)
    assert jnp.allclose(y_bf16, y_ref, atol=5e-2, rtol=5e-2), "bf16 kernel mismatch vs reference"

    print("KERNEL_OK")
</pallas_src>

<mosaic_0001>
module attributes {stable_mosaic.version = 11 : i64} {
  func.func @kernel(%arg0: i32, %arg1: memref<1x24x128xf32, #tpu.memory_space<vmem>>, %arg2: memref<128x384xf32, #tpu.memory_space<vmem>>, %arg3: memref<1x128xf32, #tpu.memory_space<vmem>>, %arg4: memref<1x16x128xf32, #tpu.memory_space<vmem>>) attributes {dimension_semantics = [#tpu.dimension_semantics<parallel>], iteration_bounds = array<i64: 2>, scalar_prefetch = 0 : i64, scratch_operands = 0 : i64, tpu.core_type = #tpu.core_type<tc>, window_params = [{transform_indices = @transform_0, window_bounds = array<i64: 1, 24, 128>}, {pipeline_mode = #tpu.pipeline_mode<synchronous>, transform_indices = @transform_1, window_bounds = array<i64: 128, 384>}, {pipeline_mode = #tpu.pipeline_mode<synchronous>, transform_indices = @transform_2, window_bounds = array<i64: 1, 128>}, {transform_indices = @transform_3, window_bounds = array<i64: 1, 16, 128>}]} {
    %c0 = arith.constant 0 : index
    %c0_0 = arith.constant 0 : index
    %c0_1 = arith.constant 0 : index
    %0 = vector.load %arg1[%c0, %c0_0, %c0_1] : memref<1x24x128xf32, #tpu.memory_space<vmem>>, vector<1x24x128xf32>
    %1 = vector.shape_cast %0 : vector<1x24x128xf32> to vector<24x128xf32>
    %c0_2 = arith.constant 0 : index
    %c0_3 = arith.constant 0 : index
    %2 = vector.load %arg2[%c0_2, %c0_3] : memref<128x384xf32, #tpu.memory_space<vmem>>, vector<128x384xf32>
    %cst = arith.constant dense<0.000000e+00> : vector<24x384xf32>
    %3 = tpu.matmul %1, %2, %cst {dimension_numbers = #tpu.dot_dimension_numbers<[1], [0], [0], [1], [0, 0, 1, 1], [], []>} : vector<24x128xf32>, vector<128x384xf32>, vector<24x384xf32> -> vector<24x384xf32>
    %c0_4 = arith.constant 0 : index
    %c0_5 = arith.constant 0 : index
    %4 = vector.load %arg3[%c0_4, %c0_5] : memref<1x128xf32, #tpu.memory_space<vmem>>, vector<1x128xf32>
    %5 = vector.extract_strided_slice %3 {offsets = [0, 0], sizes = [16, 128], strides = [1, 1]} : vector<24x384xf32> to vector<16x128xf32>
    %6 = vector.extract_strided_slice %3 {offsets = [1, 128], sizes = [16, 128], strides = [1, 1]} : vector<24x384xf32> to vector<16x128xf32>
    %7 = arith.addf %5, %6 : vector<16x128xf32>
    %8 = vector.extract_strided_slice %3 {offsets = [2, 256], sizes = [16, 128], strides = [1, 1]} : vector<24x384xf32> to vector<16x128xf32>
    %9 = arith.addf %7, %8 : vector<16x128xf32>
    %10 = vector.broadcast %4 : vector<1x128xf32> to vector<16x128xf32>
    %11 = arith.addf %9, %10 : vector<16x128xf32>
    %cst_6 = arith.constant 0.000000e+00 : f32
    %12 = vector.broadcast %cst_6 : f32 to vector<16x128xf32>
    %13 = arith.minimumf %11, %12 : vector<16x128xf32>
    %cst_7 = arith.constant 0.000000e+00 : f32
    %14 = vector.broadcast %cst_7 : f32 to vector<16x128xf32>
    %15 = arith.cmpf ogt, %11, %14 : vector<16x128xf32>
    %16 = math.exp %13 : vector<16x128xf32>
    %cst_8 = arith.constant 1.000000e+00 : f32
    %17 = vector.broadcast %cst_8 : f32 to vector<16x128xf32>
    %18 = arith.subf %16, %17 : vector<16x128xf32>
    %19 = arith.select %15, %11, %18 : vector<16x128xi1>, vector<16x128xf32>
    %c0_9 = arith.constant 0 : index
    %c0_10 = arith.constant 0 : index
    %c0_11 = arith.constant 0 : index
    %20 = vector.load %arg4[%c0_9, %c0_10, %c0_11] : memref<1x16x128xf32, #tpu.memory_space<vmem>>, vector<1x16x128xf32>
    %21 = vector.shape_cast %20 : vector<1x16x128xf32> to vector<16x128xf32>
    %22 = vector.shape_cast %19 : vector<16x128xf32> to vector<1x16x128xf32>
    tpu.vector_store %arg4[%c0_9, %c0_10, %c0_11], %22 {strides = array<i32>} : memref<1x16x128xf32, #tpu.memory_space<vmem>>, vector<1x16x128xf32>,
    return
  }
  func.func @transform_0(%arg0: i32) -> (i32, i32, i32) {
    %c0_i32 = arith.constant 0 : i32
    %c0_i32_0 = arith.constant 0 : i32
    %c0_i32_1 = arith.constant 0 : i32
    return %arg0, %c0_i32, %c0_i32_0 : i32, i32, i32
  }
  func.func @transform_1(%arg0: i32) -> (i32, i32) {
    %c0_i32 = arith.constant 0 : i32
    %c0_i32_0 = arith.constant 0 : i32
    %c0_i32_1 = arith.constant 0 : i32
    return %c0_i32, %c0_i32_0 : i32, i32
  }
  func.func @transform_2(%arg0: i32) -> (i32, i32) {
    %c0_i32 = arith.constant 0 : i32
    %c0_i32_0 = arith.constant 0 : i32
    %c0_i32_1 = arith.constant 0 : i32
    return %c0_i32, %c0_i32_0 : i32, i32
  }
  func.func @transform_3(%arg0: i32) -> (i32, i32, i32) {
    %c0_i32 = arith.constant 0 : i32
    %c0_i32_0 = arith.constant 0 : i32
    %c0_i32_1 = arith.constant 0 : i32
    return %arg0, %c0_i32, %c0_i32_0 : i32, i32, i32
  }
}

</mosaic_0001>

<bundles_post_ra>
// kernel: _lambda_.1
= control target key start
LH: loop header
LB: loop body
LE: loop exit
PB: predicated region body
PF: predicated region fallthrough
CT: control target
= control target key end

     0   :  { %s665_s12 = smov 0   ;;  %s864_s0 = inlined_call_operand.vmem [shape: f32[2,24,128], index: 0, kind: input, shape index: {}]   ;;  %s865_s1 = inlined_call_operand.vmem [shape: f32[128,384], index: 1, kind: input, shape index: {}]   ;;  %s866_s2 = inlined_call_operand.vmem [shape: f32[1,128], index: 2, kind: input, shape index: {}]   ;;  %s867_s3 = inlined_call_operand.vmem [shape: f32[2,16,128], index: 3, kind: output, shape index: {}]  }
   0x1 LB: > { %s488_s13 = sadd.s32 4294967295, %s640_s12   ;;  %p492_p0 = scmp.ge.s32.totalorder %s640_s12, 1  ;;  %s640_s12 = sphi %s665_s12, %s13_s12  }
   0x2   : > { %p137_p1 = scmp.lt.s32.totalorder %s640_s12, 3 }
   0x4   : > { %p138_p2 = pnand %p492_p0, %p137_p1 }
   0x5   : > { %v175_v0 = vld [vmem:[%s865_s1 + $0x8] sm:$0xff] (!%p138_p2)  ;;  %v178_v1 = vld [vmem:[%s865_s1 + $0x20] sm:$0xff] (!%p138_p2)  ;;  %v176_v2 = vld [vmem:[%s865_s1 + $0x10] sm:$0xff] (!%p138_p2)  ;;  %v642_v3 = vmov (!%p138_p2), 0.0|0.0   ;;  %vm643_vm0 = vmmov (!%p138_p2), 0   ;;  %v644_v8 = vmov (!%p138_p2), 0.0  }
   0x6   : > { %141 = sbr.rel (%p138_p2) target bundleno = 289 (0x121), region = 32  ;;  %594 = vmatprep.subr.bf16.mxu1 (!%p138_p2), %v642_v3  ;;  %v562_v4 = vpack.c.bf16 (!%p138_p2), %v178_v1, %v175_v0  ;;  %v179_v5 = vld [vmem:[%s865_s1 + $0x28] sm:$0xff] (!%p138_p2)  ;;  %v174_v6 = vld [vmem:[%s865_s1] sm:$0xff] (!%p138_p2)  ;;  %v177_v7 = vld [vmem:[%s865_s1 + $0x18] sm:$0xff] (!%p138_p2)  ;;  %553 = vmatprep.mubr.msk.f32.mxu1 (!%p138_p2), %vm643_vm0, %v644_v8  ;;  %p791_p3 = scmp.lt.s32.totalorder (!%p138_p2), %s488_s13, 1  ;;  %vm401_vm1 = vcmask (!%p138_p2), 1045504  }
   0x7   : > { %v595_v9 = vpack.c.bf16 (!%p138_p2), %v179_v5, %v176_v2  ;;  %v564_v10 = vpack.c.bf16 (!%p138_p2), %v177_v7, %v174_v6  ;;  %v181_v11 = vld [vmem:[%s865_s1 + $0x38] sm:$0xff] (!%p138_p2)  ;;  %v184_v12 = vld [vmem:[%s865_s1 + $0x50] sm:$0xff] (!%p138_p2)  ;;  %v182_v13 = vld [vmem:[%s865_s1 + $0x40] sm:$0xff] (!%p138_p2)  ;;  %286 = vmatprep.mubr.f32.mxu0 (!%p138_p2), %v644_v8  ;;  %vm388_vm2 = vcmask (!%p138_p2), 1046528  }
   0x8   : > { %563 = vmatprep.subr.bf16.mxu0 (!%p138_p2), %v562_v4  ;;  %v566_v14 = vpack.c.bf16 (!%p138_p2), %v184_v12, %v181_v11  ;;  %v185_v15 = vld [vmem:[%s865_s1 + $0x58] sm:$0xff] (!%p138_p2)  ;;  %v180_v16 = vld [vmem:[%s865_s1 + $0x30] sm:$0xff] (!%p138_p2)  ;;  %v183_v17 = vld [vmem:[%s865_s1 + $0x48] sm:$0xff] (!%p138_p2) }
   0x9   : > { %596 = vmatpush3.bf16.msra.mxu1 (!%p138_p2), %v595_v9  ;;  %565 = vmatpush1.bf16.msra.mxu0 (!%p138_p2), %v564_v10  ;;  %v598_v18 = vpack.c.bf16 (!%p138_p2), %v185_v15, %v182_v13  ;;  %v568_v19 = vpack.c.bf16 (!%p138_p2), %v183_v17, %v180_v16  ;;  %v187_v20 = vld [vmem:[%s865_s1 + $0x68] sm:$0xff] (!%p138_p2)  ;;  %v190_v21 = vld [vmem:[%s865_s1 + $0x80] sm:$0xff] (!%p138_p2)  ;;  %v188_v22 = vld [vmem:[%s865_s1 + $0x70] sm:$0xff] (!%p138_p2) }
   0xa   : > { %597 = vmatprep.subr.bf16.mxu1 (!%p138_p2), %v642_v3  ;;  %567 = vmatprep.subr.bf16.mxu0 (!%p138_p2), %v566_v14  ;;  %v570_v23 = vpack.c.bf16 (!%p138_p2), %v190_v21, %v187_v20  ;;  %v191_v24 = vld [vmem:[%s865_s1 + $0x88] sm:$0xff] (!%p138_p2)  ;;  %v186_v25 = vld [vmem:[%s865_s1 + $0x60] sm:$0xff] (!%p138_p2)  ;;  %v189_v26 = vld [vmem:[%s865_s1 + $0x78] sm:$0xff] (!%p138_p2) }
   0xb   : > { %v193_v27 = vld [vmem:[%s865_s1 + $0x98] sm:$0xff] (!%p138_p2)  ;;  %v196_v28 = vld [vmem:[%s865_s1 + $0xb0] sm:$0xff] (!%p138_p2)  ;;  %v601_v29 = vpack.c.bf16 (!%p138_p2), %v191_v24, %v188_v22  ;;  %v572_v30 = vpack.c.bf16 (!%p138_p2), %v189_v26, %v186_v25  ;;  %v194_v31 = vld [vmem:[%s865_s1 + $0xa0] sm:$0xff] (!%p138_p2) }
   0xc   : > { %v574_v32 = vpack.c.bf16 (!%p138_p2), %v196_v28, %v193_v27  ;;  %v197_v33 = vld [vmem:[%s865_s1 + $0xb8] sm:$0xff] (!%p138_p2)  ;;  %v192_v34 = vld [vmem:[%s865_s1 + $0x90] sm:$0xff] (!%p138_p2)  ;;  %v195_v35 = vld [vmem:[%s865_s1 + $0xa8] sm:$0xff] (!%p138_p2) }
   0xd   : > { %599 = vmatpush3.bf16.msra.mxu1 %v598_v18  ;;  %569 = vmatpush1.bf16.msra.mxu0 %v568_v19  ;;  %v199_v36 = vld [vmem:[%s865_s1 + $0xc8] sm:$0xff]  ;;  %v202_v37 = vld [vmem:[%s865_s1 + $0xe0] sm:$0xff]  ;;  %v604_v38 = vpack.c.bf16 %v197_v33, %v194_v31  ;;  %v576_v39 = vpack.c.bf16 %v195_v35, %v192_v34  ;;  %v200_v40 = vld [vmem:[%s865_s1 + $0xd0] sm:$0xff]  ;;  %s870_s13 = smov (!%p791_p3, %s488_s13), 1 }
   0xe   : > { %600 = vmatprep.subr.bf16.mxu1 %v642_v3  ;;  %571 = vmatprep.subr.bf16.mxu0 %v570_v23  ;;  %v578_v41 = vpack.c.bf16 %v202_v37, %v199_v36  ;;  %v203_v42 = vld [vmem:[%s865_s1 + $0xe8] sm:$0xff]  ;;  %v198_v43 = vld [vmem:[%s865_s1 + $0xc0] sm:$0xff]  ;;  %v201_v44 = vld [vmem:[%s865_s1 + $0xd8] sm:$0xff]  ;;  %s618_s9 = smul.u32 24, %s870_s13  ;;  %s501_s17 = sshll.u32 %s870_s13, 4 }
   0xf   : > { %v205_v45 = vld [vmem:[%s865_s1 + $0xf8] sm:$0xff]  ;;  %v208_v46 = vld [vmem:[%s865_s1 + $0x110] sm:$0xff]  ;;  %v607_v47 = vpack.c.bf16 %v203_v42, %v200_v40  ;;  %v580_v48 = vpack.c.bf16 %v201_v44, %v198_v43  ;;  %v206_v49 = vld [vmem:[%s865_s1 + $0x100] sm:$0xff]  ;;  %s170_s20 = scalar_lea.vmem %s867_s3, %s501_s17 }
  0x10   : > { %v582_v50 = vpack.c.bf16 %v208_v46, %v205_v45  ;;  %v209_v51 = vld [vmem:[%s865_s1 + $0x118] sm:$0xff]  ;;  %v204_v52 = vld [vmem:[%s865_s1 + $0xf0] sm:$0xff]  ;;  %v207_v53 = vld [vmem:[%s865_s1 + $0x108] sm:$0xff]  ;;  %s165_s14 = scalar_lea.vmem %s864_s0, %s618_s9 }
  0x11   : > { %602 = vmatpush3.bf16.msra.mxu1 %v601_v29  ;;  %573 = vmatpush1.bf16.msra.mxu0 %v572_v30  ;;  %v211_v54 = vld [vmem:[%s865_s1 + $0x128] sm:$0xff]  ;;  %v214_v55 = vld [vmem:[%s865_s1 + $0x140] sm:$0xff]  ;;  %v610_v56 = vpack.c.bf16 %v209_v51, %v206_v49  ;;  %v584_v57 = vpack.c.bf16 %v207_v53, %v204_v52  ;;  %v212_v58 = vld [vmem:[%s865_s1 + $0x130] sm:$0xff] }
  0x12   : > { %603 = vmatprep.subr.bf16.mxu1 %v642_v3  ;;  %575 = vmatprep.subr.bf16.mxu0 %v574_v32  ;;  %v586_v59 = vpack.c.bf16 %v214_v55, %v211_v54  ;;  %v215_v60 = vld [vmem:[%s865_s1 + $0x148] sm:$0xff]  ;;  %v210_v61 = vld [vmem:[%s865_s1 + $0x120] sm:$0xff]  ;;  %v213_v62 = vld [vmem:[%s865_s1 + $0x138] sm:$0xff] }
  0x13   : > { %v217_v63 = vld [vmem:[%s865_s1 + $0x158] sm:$0xff]  ;;  %v220_v0 = vld [vmem:[%s865_s1 + $0x170] sm:$0xff]  ;;  %v613_v1 = vpack.c.bf16 %v215_v60, %v212_v58  ;;  %v588_v2 = vpack.c.bf16 %v213_v62, %v210_v61  ;;  %v218_v4 = vld [vmem:[%s865_s1 + $0x160] sm:$0xff] }
  0x14   : > { %v590_v5 = vpack.c.bf16 %v220_v0, %v217_v63  ;;  %v221_v6 = vld [vmem:[%s865_s1 + $0x178] sm:$0xff]  ;;  %v216_v7 = vld [vmem:[%s865_s1 + $0x150] sm:$0xff]  ;;  %v219_v9 = vld [vmem:[%s865_s1 + $0x168] sm:$0xff] }
  0x15   : > { %605 = vmatpush3.bf16.msra.mxu1 %v604_v38  ;;  %577 = vmatpush1.bf16.msra.mxu0 %v576_v39  ;;  %v616_v10 = vpack.c.bf16 %v221_v6, %v218_v4  ;;  %v592_v11 = vpack.c.bf16 %v219_v9, %v216_v7  ;;  %v171_v12 = vld [vmem:[%s165_s14] sm:$0xff]  ;;  %v172_v13 = vld [vmem:[%s165_s14 + $0x8] sm:$0xff] }
  0x16   : > { %606 = vmatprep.subr.bf16.mxu1 %v642_v3  ;;  %579 = vmatprep.subr.bf16.mxu0 %v578_v41  ;;  %v496_v33 = vld [vmem:[%s866_s2] ss:$0 sm:$0xff] }
  0x19   : > { %608 = vmatpush3.bf16.msra.mxu1 %v607_v47  ;;  %581 = vmatpush1.bf16.msra.mxu0 %v580_v48 }
  0x1a   : > { %609 = vmatprep.subr.bf16.mxu1 %v642_v3  ;;  %583 = vmatprep.subr.bf16.mxu0 %v582_v50 }
  0x1d   : > { %611 = vmatpush3.bf16.msra.mxu1 %v610_v56  ;;  %585 = vmatpush1.bf16.msra.mxu0 %v584_v57 }
  0x1e   : > { %612 = vmatprep.subr.bf16.mxu1 %v642_v3  ;;  %587 = vmatprep.subr.bf16.mxu0 %v586_v59 }
  0x21   : > { %614 = vmatpush3.bf16.msra.mxu1 %v613_v1  ;;  %589 = vmatpush1.bf16.msra.mxu0 %v588_v2 }
  0x22   : > { %615 = vmatprep.subr.bf16.mxu1 %v642_v3  ;;  %591 = vmatprep.subr.bf16.mxu0 %v590_v5  ;;  %v173_v3 = vld [vmem:[%s165_s14 + $0x10] sm:$0xff] }
  0x25   : > { %617 = vmatpush3.bf16.msra.mxu1 %v616_v10  ;;  %593 = vmatpush1.bf16.msra.mxu0 %v592_v11 }
  0x28   : > { %554 = vmatmul.mubr.f32.vlgmr.msra.gmra.mrb[0].mxu1 %v171_v12  ;;  %287 = vmatmul.mubr.f32.vlgmr.msra.gmra.mrb[0].mxu0 %v171_v12 }
  0x29   : > { %556 = vmatprep.mubr.msk.f32.mxu1 %vm643_vm0, %v644_v8  ;;  %292 = vmatprep.mubr.f32.mxu0 %v644_v8 }
  0x2c   : > { %557 = vmatmul.mubr.f32.gmra.mrb[2].mxu1 %v172_v13  ;;  %293 = vmatmul.mubr.f32.gmra.mrb[2].mxu0 %v172_v13 }
  0x2d   : > { %559 = vmatprep.mubr.msk.f32.mxu1 %vm643_vm0, %v644_v8  ;;  %298 = vmatprep.mubr.f32.mxu0 %v644_v8 }
  0x30   : > { %560 = vmatmul.mubr.f32.gmra.mrb[4].mxu1 %v173_v3  ;;  %299 = vmatmul.mubr.f32.gmra.mrb[4].mxu0 %v173_v3 }
  0xfb   : > { %v288_v14 = vpop.f32.mrb[0].mxu0  ;;  %v370_v15 = vpop.f32.mrb[0].mxu1 }
  0xfc   : > { %v290_v16 = vpop.f32.mrb[1].mxu0  ;;  %v555_v17 = vpop.f32.mrb[1].mxu1  ;;  %v402_v18 = vrot.slane %v370_v15, 2 }
  0xfd   : > { %v389_v24 = vrot.slane %v290_v16, 1 }
  0xff   : > { %v375_v19 = vpop.f32.mrb[2].mxu1  ;;  %v294_v20 = vpop.f32.mrb[2].mxu0 }
 0x100   : > { %v403_v21 = vrot.slane %v375_v19, 2  ;;  %v296_v22 = vpop.f32.mrb[3].mxu0  ;;  %v558_v23 = vpop.f32.mrb[3].mxu1 }
 0x101   : > { %v390_v25 = vrot.slane %v296_v22, 1 }
 0x102   : > { %v404_v26 = vsel %vm401_vm1, %v402_v18, %v403_v21 }
 0x103   : > { %v391_v8 = vsel %vm388_vm2, %v389_v24, %v390_v25  ;;  %v380_v27 = vpop.f32.mrb[4].mxu1  ;;  %v300_v28 = vpop.f32.mrb[4].mxu0 }
 0x104   : > { %v396_v29 = vadd.f32 %v391_v8, %v288_v14  ;;  %v405_v30 = vrot.slane %v380_v27, 2  ;;  %v301_v31 = vpop.f32.mrb[5].mxu0  ;;  %v561_v32 = vpop.f32.mrb[5].mxu1 }
 0x105   : > { %v392_v34 = vrot.slane %v301_v31, 1 }
 0x106   : > { %v409_v35 = vadd.f32 %v404_v26, %v396_v29  ;;  %v406_v36 = vsel %vm401_vm1, %v403_v21, %v405_v30 }
 0x107   : > { %v393_v37 = vsel %vm388_vm2, %v390_v25, %v392_v34 }
 0x108   : > { %v417_v38 = vadd.f32 %v496_v33, %v409_v35  ;;  %v397_v39 = vadd.f32 %v393_v37, %v294_v20 }
 0x10a   : > { %v419_v40 = vmin.f32 %v417_v38, 0.0  ;;  %v410_v41 = vadd.f32 %v406_v36, %v397_v39  ;;  %vm421_vm3 = vcmp.gt.f32.partialorder %v417_v38, 0.0 }
 0x10c   : > { %v423_v42 = vmul.f32 1.442695, %v419_v40  ;;  %v418_v43 = vadd.f32 %v496_v33, %v410_v41 }
 0x10e   : > { %630 = vpow2.f32 %v423_v42  ;;  %v420_v44 = vmin.f32 %v418_v43, 0.0  ;;  %vm422_vm4 = vcmp.gt.f32.partialorder %v418_v43, 0.0 }
 0x110   : > { %v425_v45 = vmul.f32 1.442695, %v420_v44 }
 0x112   : > { %632 = vpow2.f32 %v425_v45 }
 0x118   : > { %v631_v46 = vpop.eup %630 }
 0x119   : > { %v497_v47 = vadd.f32 -1.0, %v631_v46 }
 0x11b   : > { %v429_v48 = vsel %vm421_vm3, %v417_v38, %v497_v47 }
 0x11c   : > { %v633_v49 = vpop.eup %632  ;;  %431 = vst [vmem:[%s170_s20] sm:$0xff] %v429_v48 }
 0x11d   : > { %v498_v50 = vadd.f32 -1.0, %v633_v49 }
 0x11f   : > { %v430_v51 = vsel %vm422_vm4, %v418_v43, %v498_v50 }
 0x120   : > { %432 = vst [vmem:[%s170_s20 + $0x8] sm:$0xff] %v430_v51 }
 0x121 PF: > { %s13_s12 = sadd.s32 1, %s640_s12  }
 0x122   : > { %p10_p4 = scmp.ge.s32.totalorder %s13_s12, 4  }
 0x124   :  { %12 = sbr.rel (!%p10_p4) target bundleno = 1 (0x1), region = 62 }

</bundles_post_ra>
